<compile_context>
chip_gen: v6e
topology: v6e:2x2x1
jax: 0.10.0
libtpu: 0.0.40
codegen_flags: <defaults>
</compile_context>

<pallas_src>
import math
import functools

import jax
import jax.numpy as jnp
from jax.experimental import pallas as pl
from jax.experimental.pallas import tpu as pltpu


def _mha_kernel(q_ref, k_ref, v_ref,
                wq_ref, wk_ref, wv_ref, wfc_ref,
                gamma_ref, beta_ref,
                out_ref, attn_ref,
                *, eps):
    """One grid step == one (batch, head) pair.

    q/k/v refs:   (S, d_model) bf16 (constant over the head axis -> DMA'd once
                  per batch element).
    wq/wk/wv/wfc: per-head weight slices, bf16 (scale folded into wq).
    out_ref:      (S, d_model) f32 — resident across the head axis; used as the
                  output-projection accumulator, LayerNorm applied on last head.
    attn_ref:     (S, S) f32 — the (b, h) tile of the attention-weights output.
    """
    h = pl.program_id(1)
    last_h = pl.num_programs(1) - 1
    f32 = jnp.float32
    bf16 = jnp.bfloat16

    @pl.when(h == 0)
    def _():
        out_ref[...] = jnp.zeros_like(out_ref)

    # Per-head projections: (S, d_model) @ (d_model, d) — bf16 in, f32 acc.
    qh = jnp.dot(q_ref[...], wq_ref[...], preferred_element_type=f32)   # (S, d_qk)
    kh = jnp.dot(k_ref[...], wk_ref[...], preferred_element_type=f32)   # (S, d_qk)
    vh = jnp.dot(v_ref[...], wv_ref[...], preferred_element_type=f32)   # (S, d_v)

    # scores = qh @ kh^T without an explicit transpose (contract last dims).
    scores = jax.lax.dot_general(
        qh.astype(bf16), kh.astype(bf16),
        dimension_numbers=(((1,), (1,)), ((), ())),
        preferred_element_type=f32)                                      # (S, S)

    # Numerically-stable softmax in f32; reciprocal goes to the EUP slot.
    m = jnp.max(scores, axis=-1, keepdims=True)
    e = jnp.exp(scores - m)
    p = e * pl.reciprocal(jnp.sum(e, axis=-1, keepdims=True), approx=True)

    attn_ref[...] = p   # dropout is identity in eval; mask=None path

    # concat(heads) @ W_fc  ==  sum_h (p_h @ v_h) @ W_fc[h]  — accumulate.
    pv = jnp.dot(p.astype(bf16), vh.astype(bf16), preferred_element_type=f32)
    out_ref[...] += jnp.dot(pv.astype(bf16), wfc_ref[...],
                            preferred_element_type=f32)                  # (S, d_model)

    # LayerNorm (biased variance, eps inside rsqrt — PyTorch semantics) once
    # all heads have been accumulated.
    @pl.when(h == last_h)
    def _():
        x = out_ref[...]
        mean = jnp.mean(x, axis=-1, keepdims=True)
        c = x - mean
        var = jnp.mean(c * c, axis=-1, keepdims=True)
        out_ref[...] = c * jax.lax.rsqrt(var + eps) * gamma_ref[...] + beta_ref[...]


def multi_head_attention(q, k, v, wq, wk, wv, wfc, gamma, beta,
                         *, num_heads, d_qk, d_v, eps=1e-6):
    """q, k, v: (B, S, d_model) f32.  Weights stored as (in_features, out_features).

    Returns (out (B, S, d_model) f32, attn (B, H, S, S) f32).
    """
    B, S, d_model = q.shape
    scale = 1.0 / math.sqrt(d_qk)
    bf16 = jnp.bfloat16

    # Wrapper-side layout plumbing: split weights per head so the kernel never
    # lane-slices at non-128-aligned offsets, and fold the 1/sqrt(d_qk) scale
    # into W_q once.
    wq_h = (wq.astype(jnp.float32) * scale).reshape(
        d_model, num_heads, d_qk).transpose(1, 0, 2).astype(bf16)   # (H, dm, d_qk)
    wk_h = wk.reshape(d_model, num_heads, d_qk).transpose(1, 0, 2).astype(bf16)
    wv_h = wv.reshape(d_model, num_heads, d_v).transpose(1, 0, 2).astype(bf16)
    wfc_h = wfc.reshape(num_heads, d_v, d_model).astype(bf16)       # (H, d_v, dm)

    q_b = q.astype(bf16)
    k_b = k.astype(bf16)
    v_b = v.astype(bf16)

    gamma2 = gamma.reshape(1, d_model).astype(jnp.float32)
    beta2 = beta.reshape(1, d_model).astype(jnp.float32)

    kernel = functools.partial(_mha_kernel, eps=eps)

    grid_spec = pltpu.PrefetchScalarGridSpec(
        num_scalar_prefetch=0,
        grid=(B, num_heads),
        in_specs=[
            pl.BlockSpec((None, S, d_model), lambda b, h: (b, 0, 0)),     # q
            pl.BlockSpec((None, S, d_model), lambda b, h: (b, 0, 0)),     # k
            pl.BlockSpec((None, S, d_model), lambda b, h: (b, 0, 0)),     # v
            pl.BlockSpec((None, d_model, d_qk), lambda b, h: (h, 0, 0)),  # wq_h
            pl.BlockSpec((None, d_model, d_qk), lambda b, h: (h, 0, 0)),  # wk_h
            pl.BlockSpec((None, d_model, d_v), lambda b, h: (h, 0, 0)),   # wv_h
            pl.BlockSpec((None, d_v, d_model), lambda b, h: (h, 0, 0)),   # wfc_h
            pl.BlockSpec((1, d_model), lambda b, h: (0, 0)),              # gamma
            pl.BlockSpec((1, d_model), lambda b, h: (0, 0)),              # beta
        ],
        out_specs=[
            # out: resident across the head axis (accumulator), written back
            # when b changes.
            pl.BlockSpec((None, S, d_model), lambda b, h: (b, 0, 0)),
            # attn: one (S, S) tile per (b, h) grid step.
            pl.BlockSpec((None, None, S, S), lambda b, h: (b, h, 0, 0)),
        ],
    )

    out, attn = pl.pallas_call(
        kernel,
        out_shape=(
            jax.ShapeDtypeStruct((B, S, d_model), jnp.float32),
            jax.ShapeDtypeStruct((B, num_heads, S, S), jnp.float32),
        ),
        grid_spec=grid_spec,
        compiler_params=pltpu.CompilerParams(
            dimension_semantics=("parallel", "arbitrary"),
            vmem_limit_bytes=64 * 1024 * 1024),
    )(q_b, k_b, v_b, wq_h, wk_h, wv_h, wfc_h, gamma2, beta2)
    return out, attn


def _reference(q, k, v, wq, wk, wv, wfc, gamma, beta, *, num_heads, d_qk, d_v,
               eps=1e-6):
    """Pure-JAX f32 reference mirroring the PyTorch forward (mask=None, eval)."""
    B, S, d_model = q.shape
    qp = (q @ wq).reshape(B, S, num_heads, d_qk).transpose(0, 2, 1, 3)
    kp = (k @ wk).reshape(B, S, num_heads, d_qk).transpose(0, 2, 1, 3)
    vp = (v @ wv).reshape(B, S, num_heads, d_v).transpose(0, 2, 1, 3)
    scores = jnp.einsum('bhqd,bhkd->bhqk', qp, kp) / math.sqrt(d_qk)
    attn = jax.nn.softmax(scores, axis=-1)
    res = jnp.einsum('bhqk,bhkd->bhqd', attn, vp)
    res = res.transpose(0, 2, 1, 3).reshape(B, S, num_heads * d_v)
    proj = res @ wfc
    mean = jnp.mean(proj, axis=-1, keepdims=True)
    c = proj - mean
    var = jnp.mean(c * c, axis=-1, keepdims=True)
    out = c * jax.lax.rsqrt(var + eps) * gamma + beta
    return out, attn


if __name__ == "__main__":
    # Small shapes consistent with the module.
    B, S, d_model = 2, 8, 32
    num_heads, d_qk, d_v = 4, 8, 8

    key = jax.random.PRNGKey(0)
    k_q, k_k, k_v, k_wq, k_wk, k_wv, k_wfc = jax.random.split(key, 7)

    q = jax.random.normal(k_q, (B, S, d_model), dtype=jnp.float32)
    k = jax.random.normal(k_k, (B, S, d_model), dtype=jnp.float32)
    v = jax.random.normal(k_v, (B, S, d_model), dtype=jnp.float32)

    # Deterministic parameter init; weights stored as (in_features, out_features).
    def lin_init(rng, fan_in, fan_out):
        bound = 1.0 / math.sqrt(fan_in)
        return jax.random.uniform(rng, (fan_in, fan_out),
                                  minval=-bound, maxval=bound,
                                  dtype=jnp.float32)

    wq = lin_init(k_wq, d_model, num_heads * d_qk)
    wk = lin_init(k_wk, d_model, num_heads * d_qk)
    wv = lin_init(k_wv, d_model, num_heads * d_v)
    wfc = lin_init(k_wfc, num_heads * d_v, d_model)

    gamma = jnp.ones((d_model,), dtype=jnp.float32)
    beta = jnp.zeros((d_model,), dtype=jnp.float32)

    out, attn = multi_head_attention(
        q, k, v, wq, wk, wv, wfc, gamma, beta,
        num_heads=num_heads, d_qk=d_qk, d_v=d_v, eps=1e-6)
    jax.block_until_ready((out, attn))

    assert out.shape == (B, S, d_model)
    assert attn.shape == (B, num_heads, S, S)

    # Loose sanity check against an f32 reference (kernel uses bf16 matmul
    # operands + approx reciprocal, so tolerances are generous).
    out_ref, attn_ref = _reference(
        q, k, v, wq, wk, wv, wfc, gamma, beta,
        num_heads=num_heads, d_qk=d_qk, d_v=d_v, eps=1e-6)
    assert bool(jnp.allclose(out, out_ref, atol=0.15, rtol=0.1)), "out mismatch"
    assert bool(jnp.allclose(attn, attn_ref, atol=0.05, rtol=0.1)), "attn mismatch"

    print("KERNEL_OK")
</pallas_src>

<mosaic_0001>
module attributes {stable_mosaic.version = 11 : i64} {
  func.func @_mha_kernel(%arg0: i32, %arg1: i32, %arg2: memref<1x8x32xbf16, #tpu.memory_space<vmem>>, %arg3: memref<1x8x32xbf16, #tpu.memory_space<vmem>>, %arg4: memref<1x8x32xbf16, #tpu.memory_space<vmem>>, %arg5: memref<1x32x8xbf16, #tpu.memory_space<vmem>>, %arg6: memref<1x32x8xbf16, #tpu.memory_space<vmem>>, %arg7: memref<1x32x8xbf16, #tpu.memory_space<vmem>>, %arg8: memref<1x8x32xbf16, #tpu.memory_space<vmem>>, %arg9: memref<1x32xf32, #tpu.memory_space<vmem>>, %arg10: memref<1x32xf32, #tpu.memory_space<vmem>>, %arg11: memref<1x8x32xf32, #tpu.memory_space<vmem>>, %arg12: memref<1x1x8x8xf32, #tpu.memory_space<vmem>>) attributes {dimension_semantics = [#tpu.dimension_semantics<parallel>, #tpu.dimension_semantics<arbitrary>], iteration_bounds = array<i64: 2, 4>, scalar_prefetch = 0 : i64, scratch_operands = 0 : i64, tpu.core_type = #tpu.core_type<tc>, window_params = [{transform_indices = @transform_0, window_bounds = array<i64: 1, 8, 32>}, {transform_indices = @transform_1, window_bounds = array<i64: 1, 8, 32>}, {transform_indices = @transform_2, window_bounds = array<i64: 1, 8, 32>}, {transform_indices = @transform_3, window_bounds = array<i64: 1, 32, 8>}, {transform_indices = @transform_4, window_bounds = array<i64: 1, 32, 8>}, {transform_indices = @transform_5, window_bounds = array<i64: 1, 32, 8>}, {transform_indices = @transform_6, window_bounds = array<i64: 1, 8, 32>}, {pipeline_mode = #tpu.pipeline_mode<synchronous>, transform_indices = @transform_7, window_bounds = array<i64: 1, 32>}, {pipeline_mode = #tpu.pipeline_mode<synchronous>, transform_indices = @transform_8, window_bounds = array<i64: 1, 32>}, {transform_indices = @transform_9, window_bounds = array<i64: 1, 8, 32>}, {transform_indices = @transform_10, window_bounds = array<i64: 1, 1, 8, 8>}]} {
    %c0_i32 = arith.constant 0 : i32
    %0 = arith.cmpi eq, %arg1, %c0_i32 : i32
    %1 = arith.extui %0 : i1 to i32
    %c0_i32_0 = arith.constant 0 : i32
    %2 = arith.cmpi ne, %1, %c0_i32_0 : i32
    scf.if %2 {
      %cst_39 = arith.constant 0.000000e+00 : f32
      %50 = vector.broadcast %cst_39 : f32 to vector<8x32xf32>
      %c0_40 = arith.constant 0 : index
      %c0_41 = arith.constant 0 : index
      %c0_42 = arith.constant 0 : index
      %51 = vector.load %arg11[%c0_40, %c0_41, %c0_42] : memref<1x8x32xf32, #tpu.memory_space<vmem>>, vector<1x8x32xf32>
      %52 = vector.shape_cast %51 : vector<1x8x32xf32> to vector<8x32xf32>
      %53 = vector.shape_cast %50 : vector<8x32xf32> to vector<1x8x32xf32>
      tpu.vector_store %arg11[%c0_40, %c0_41, %c0_42], %53 {strides = array<i32>} : memref<1x8x32xf32, #tpu.memory_space<vmem>>, vector<1x8x32xf32>,
    } else {
    }
    %c0 = arith.constant 0 : index
    %c0_1 = arith.constant 0 : index
    %c0_2 = arith.constant 0 : index
    %3 = vector.load %arg2[%c0, %c0_1, %c0_2] : memref<1x8x32xbf16, #tpu.memory_space<vmem>>, vector<1x8x32xbf16>
    %4 = vector.shape_cast %3 : vector<1x8x32xbf16> to vector<8x32xbf16>
    %c0_3 = arith.constant 0 : index
    %c0_4 = arith.constant 0 : index
    %c0_5 = arith.constant 0 : index
    %5 = vector.load %arg5[%c0_3, %c0_4, %c0_5] : memref<1x32x8xbf16, #tpu.memory_space<vmem>>, vector<1x32x8xbf16>
    %6 = vector.shape_cast %5 : vector<1x32x8xbf16> to vector<32x8xbf16>
    %cst = arith.constant dense<0.000000e+00> : vector<8x8xf32>
    %7 = tpu.matmul %4, %6, %cst {dimension_numbers = #tpu.dot_dimension_numbers<[1], [0], [0], [1], [0, 0, 1, 1], [], []>} : vector<8x32xbf16>, vector<32x8xbf16>, vector<8x8xf32> -> vector<8x8xf32>
    %c0_6 = arith.constant 0 : index
    %c0_7 = arith.constant 0 : index
    %c0_8 = arith.constant 0 : index
    %8 = vector.load %arg3[%c0_6, %c0_7, %c0_8] : memref<1x8x32xbf16, #tpu.memory_space<vmem>>, vector<1x8x32xbf16>
    %9 = vector.shape_cast %8 : vector<1x8x32xbf16> to vector<8x32xbf16>
    %c0_9 = arith.constant 0 : index
    %c0_10 = arith.constant 0 : index
    %c0_11 = arith.constant 0 : index
    %10 = vector.load %arg6[%c0_9, %c0_10, %c0_11] : memref<1x32x8xbf16, #tpu.memory_space<vmem>>, vector<1x32x8xbf16>
    %11 = vector.shape_cast %10 : vector<1x32x8xbf16> to vector<32x8xbf16>
    %cst_12 = arith.constant dense<0.000000e+00> : vector<8x8xf32>
    %12 = tpu.matmul %9, %11, %cst_12 {dimension_numbers = #tpu.dot_dimension_numbers<[1], [0], [0], [1], [0, 0, 1, 1], [], []>} : vector<8x32xbf16>, vector<32x8xbf16>, vector<8x8xf32> -> vector<8x8xf32>
    %c0_13 = arith.constant 0 : index
    %c0_14 = arith.constant 0 : index
    %c0_15 = arith.constant 0 : index
    %13 = vector.load %arg4[%c0_13, %c0_14, %c0_15] : memref<1x8x32xbf16, #tpu.memory_space<vmem>>, vector<1x8x32xbf16>
    %14 = vector.shape_cast %13 : vector<1x8x32xbf16> to vector<8x32xbf16>
    %c0_16 = arith.constant 0 : index
    %c0_17 = arith.constant 0 : index
    %c0_18 = arith.constant 0 : index
    %15 = vector.load %arg7[%c0_16, %c0_17, %c0_18] : memref<1x32x8xbf16, #tpu.memory_space<vmem>>, vector<1x32x8xbf16>
    %16 = vector.shape_cast %15 : vector<1x32x8xbf16> to vector<32x8xbf16>
    %cst_19 = arith.constant dense<0.000000e+00> : vector<8x8xf32>
    %17 = tpu.matmul %14, %16, %cst_19 {dimension_numbers = #tpu.dot_dimension_numbers<[1], [0], [0], [1], [0, 0, 1, 1], [], []>} : vector<8x32xbf16>, vector<32x8xbf16>, vector<8x8xf32> -> vector<8x8xf32>
    %18 = arith.truncf %7 : vector<8x8xf32> to vector<8x8xbf16>
    %19 = arith.truncf %12 : vector<8x8xf32> to vector<8x8xbf16>
    %cst_20 = arith.constant dense<0.000000e+00> : vector<8x8xf32>
    %20 = tpu.matmul %18, %19, %cst_20 {dimension_numbers = #tpu.dot_dimension_numbers<[1], [1], [0], [0], [0, 0, 1, 0], [], []>} : vector<8x8xbf16>, vector<8x8xbf16>, vector<8x8xf32> -> vector<8x8xf32>
    %cst_21 = arith.constant dense<0xFF800000> : vector<8xf32>
    %21 = vector.multi_reduction <maximumf>, %20, %cst_21 [1] : vector<8x8xf32> to vector<8xf32>
    %22 = vector.shape_cast %21 : vector<8xf32> to vector<8x1xf32>
    %23 = vector.broadcast %22 : vector<8x1xf32> to vector<8x8xf32>
    %24 = arith.subf %20, %23 : vector<8x8xf32>
    %25 = math.exp %24 : vector<8x8xf32>
    %cst_22 = arith.constant dense<0.000000e+00> : vector<8xf32>
    %26 = vector.multi_reduction <add>, %25, %cst_22 [1] : vector<8x8xf32> to vector<8xf32>
    %27 = vector.shape_cast %26 : vector<8xf32> to vector<8x1xf32>
    %28 = tpu.reciprocal %27 {approx = true} : vector<8x1xf32> -> vector<8x1xf32>
    %29 = vector.broadcast %28 : vector<8x1xf32> to vector<8x8xf32>
    %30 = arith.mulf %25, %29 : vector<8x8xf32>
    %c0_23 = arith.constant 0 : index
    %c0_24 = arith.constant 0 : index
    %c0_25 = arith.constant 0 : index
    %c0_26 = arith.constant 0 : index
    %31 = vector.load %arg12[%c0_23, %c0_24, %c0_25, %c0_26] : memref<1x1x8x8xf32, #tpu.memory_space<vmem>>, vector<1x1x8x8xf32>
    %32 = vector.shape_cast %31 : vector<1x1x8x8xf32> to vector<8x8xf32>
    %33 = vector.shape_cast %30 : vector<8x8xf32> to vector<1x1x8x8xf32>
    tpu.vector_store %arg12[%c0_23, %c0_24, %c0_25, %c0_26], %33 {strides = array<i32>} : memref<1x1x8x8xf32, #tpu.memory_space<vmem>>, vector<1x1x8x8xf32>,
    %34 = arith.truncf %30 : vector<8x8xf32> to vector<8x8xbf16>
    %35 = arith.truncf %17 : vector<8x8xf32> to vector<8x8xbf16>
    %cst_27 = arith.constant dense<0.000000e+00> : vector<8x8xf32>
    %36 = tpu.matmul %34, %35, %cst_27 {dimension_numbers = #tpu.dot_dimension_numbers<[1], [0], [0], [1], [0, 0, 1, 1], [], []>} : vector<8x8xbf16>, vector<8x8xbf16>, vector<8x8xf32> -> vector<8x8xf32>
    %c0_28 = arith.constant 0 : index
    %c0_29 = arith.constant 0 : index
    %c0_30 = arith.constant 0 : index
    %37 = vector.load %arg11[%c0_28, %c0_29, %c0_30] : memref<1x8x32xf32, #tpu.memory_space<vmem>>, vector<1x8x32xf32>
    %38 = vector.shape_cast %37 : vector<1x8x32xf32> to vector<8x32xf32>
    %39 = arith.truncf %36 : vector<8x8xf32> to vector<8x8xbf16>
    %c0_31 = arith.constant 0 : index
    %c0_32 = arith.constant 0 : index
    %c0_33 = arith.constant 0 : index
    %40 = vector.load %arg8[%c0_31, %c0_32, %c0_33] : memref<1x8x32xbf16, #tpu.memory_space<vmem>>, vector<1x8x32xbf16>
    %41 = vector.shape_cast %40 : vector<1x8x32xbf16> to vector<8x32xbf16>
    %cst_34 = arith.constant dense<0.000000e+00> : vector<8x32xf32>
    %42 = tpu.matmul %39, %41, %cst_34 {dimension_numbers = #tpu.dot_dimension_numbers<[1], [0], [0], [1], [0, 0, 1, 1], [], []>} : vector<8x8xbf16>, vector<8x32xbf16>, vector<8x32xf32> -> vector<8x32xf32>
    %43 = arith.addf %38, %42 : vector<8x32xf32>
    %c0_35 = arith.constant 0 : index
    %c0_36 = arith.constant 0 : index
    %c0_37 = arith.constant 0 : index
    %44 = vector.load %arg11[%c0_35, %c0_36, %c0_37] : memref<1x8x32xf32, #tpu.memory_space<vmem>>, vector<1x8x32xf32>
    %45 = vector.shape_cast %44 : vector<1x8x32xf32> to vector<8x32xf32>
    %46 = vector.shape_cast %43 : vector<8x32xf32> to vector<1x8x32xf32>
    tpu.vector_store %arg11[%c0_35, %c0_36, %c0_37], %46 {strides = array<i32>} : memref<1x8x32xf32, #tpu.memory_space<vmem>>, vector<1x8x32xf32>,
    %c3_i32 = arith.constant 3 : i32
    %47 = arith.cmpi eq, %arg1, %c3_i32 : i32
    %48 = arith.extui %47 : i1 to i32
    %c0_i32_38 = arith.constant 0 : i32
    %49 = arith.cmpi ne, %48, %c0_i32_38 : i32
    scf.if %49 {
      %c0_39 = arith.constant 0 : index
      %c0_40 = arith.constant 0 : index
      %c0_41 = arith.constant 0 : index
      %50 = vector.load %arg11[%c0_39, %c0_40, %c0_41] : memref<1x8x32xf32, #tpu.memory_space<vmem>>, vector<1x8x32xf32>
      %51 = vector.shape_cast %50 : vector<1x8x32xf32> to vector<8x32xf32>
      %cst_42 = arith.constant dense<0.000000e+00> : vector<8xf32>
      %52 = vector.multi_reduction <add>, %51, %cst_42 [1] : vector<8x32xf32> to vector<8xf32>
      %53 = vector.shape_cast %52 : vector<8xf32> to vector<8x1xf32>
      %cst_43 = arith.constant 3.200000e+01 : f32
      %54 = vector.broadcast %cst_43 : f32 to vector<8x1xf32>
      %55 = arith.divf %53, %54 : vector<8x1xf32>
      %56 = vector.broadcast %55 : vector<8x1xf32> to vector<8x32xf32>
      %57 = arith.subf %51, %56 : vector<8x32xf32>
      %58 = arith.mulf %57, %57 : vector<8x32xf32>
      %cst_44 = arith.constant dense<0.000000e+00> : vector<8xf32>
      %59 = vector.multi_reduction <add>, %58, %cst_44 [1] : vector<8x32xf32> to vector<8xf32>
      %60 = vector.shape_cast %59 : vector<8xf32> to vector<8x1xf32>
      %cst_45 = arith.constant 3.200000e+01 : f32
      %61 = vector.broadcast %cst_45 : f32 to vector<8x1xf32>
      %62 = arith.divf %60, %61 : vector<8x1xf32>
      %cst_46 = arith.constant 9.99999997E-7 : f32
      %63 = vector.broadcast %cst_46 : f32 to vector<8x1xf32>
      %64 = arith.addf %62, %63 : vector<8x1xf32>
      %65 = math.rsqrt %64 : vector<8x1xf32>
      %66 = vector.broadcast %65 : vector<8x1xf32> to vector<8x32xf32>
      %67 = arith.mulf %57, %66 : vector<8x32xf32>
      %c0_47 = arith.constant 0 : index
      %c0_48 = arith.constant 0 : index
      %68 = vector.load %arg9[%c0_47, %c0_48] : memref<1x32xf32, #tpu.memory_space<vmem>>, vector<1x32xf32>
      %69 = vector.broadcast %68 : vector<1x32xf32> to vector<8x32xf32>
      %70 = arith.mulf %67, %69 : vector<8x32xf32>
      %c0_49 = arith.constant 0 : index
      %c0_50 = arith.constant 0 : index
      %71 = vector.load %arg10[%c0_49, %c0_50] : memref<1x32xf32, #tpu.memory_space<vmem>>, vector<1x32xf32>
      %72 = vector.broadcast %71 : vector<1x32xf32> to vector<8x32xf32>
      %73 = arith.addf %70, %72 : vector<8x32xf32>
      %c0_51 = arith.constant 0 : index
      %c0_52 = arith.constant 0 : index
      %c0_53 = arith.constant 0 : index
      %74 = vector.load %arg11[%c0_51, %c0_52, %c0_53] : memref<1x8x32xf32, #tpu.memory_space<vmem>>, vector<1x8x32xf32>
      %75 = vector.shape_cast %74 : vector<1x8x32xf32> to vector<8x32xf32>
      %76 = vector.shape_cast %73 : vector<8x32xf32> to vector<1x8x32xf32>
      tpu.vector_store %arg11[%c0_51, %c0_52, %c0_53], %76 {strides = array<i32>} : memref<1x8x32xf32, #tpu.memory_space<vmem>>, vector<1x8x32xf32>,
    } else {
    }
    return
  }
  func.func @transform_0(%arg0: i32, %arg1: i32) -> (i32, i32, i32) {
    %c0_i32 = arith.constant 0 : i32
    %c0_i32_0 = arith.constant 0 : i32
    %c0_i32_1 = arith.constant 0 : i32
    return %arg0, %c0_i32, %c0_i32_0 : i32, i32, i32
  }
  func.func @transform_1(%arg0: i32, %arg1: i32) -> (i32, i32, i32) {
    %c0_i32 = arith.constant 0 : i32
    %c0_i32_0 = arith.constant 0 : i32
    %c0_i32_1 = arith.constant 0 : i32
    return %arg0, %c0_i32, %c0_i32_0 : i32, i32, i32
  }
  func.func @transform_2(%arg0: i32, %arg1: i32) -> (i32, i32, i32) {
    %c0_i32 = arith.constant 0 : i32
    %c0_i32_0 = arith.constant 0 : i32
    %c0_i32_1 = arith.constant 0 : i32
    return %arg0, %c0_i32, %c0_i32_0 : i32, i32, i32
  }
  func.func @transform_3(%arg0: i32, %arg1: i32) -> (i32, i32, i32) {
    %c0_i32 = arith.constant 0 : i32
    %c0_i32_0 = arith.constant 0 : i32
    %c0_i32_1 = arith.constant 0 : i32
    return %arg1, %c0_i32, %c0_i32_0 : i32, i32, i32
  }
  func.func @transform_4(%arg0: i32, %arg1: i32) -> (i32, i32, i32) {
    %c0_i32 = arith.constant 0 : i32
    %c0_i32_0 = arith.constant 0 : i32
    %c0_i32_1 = arith.constant 0 : i32
    return %arg1, %c0_i32, %c0_i32_0 : i32, i32, i32
  }
  func.func @transform_5(%arg0: i32, %arg1: i32) -> (i32, i32, i32) {
    %c0_i32 = arith.constant 0 : i32
    %c0_i32_0 = arith.constant 0 : i32
    %c0_i32_1 = arith.constant 0 : i32
    return %arg1, %c0_i32, %c0_i32_0 : i32, i32, i32
  }
  func.func @transform_6(%arg0: i32, %arg1: i32) -> (i32, i32, i32) {
    %c0_i32 = arith.constant 0 : i32
    %c0_i32_0 = arith.constant 0 : i32
    %c0_i32_1 = arith.constant 0 : i32
    return %arg1, %c0_i32, %c0_i32_0 : i32, i32, i32
  }
  func.func @transform_7(%arg0: i32, %arg1: i32) -> (i32, i32) {
    %c0_i32 = arith.constant 0 : i32
    %c0_i32_0 = arith.constant 0 : i32
    %c0_i32_1 = arith.constant 0 : i32
    return %c0_i32, %c0_i32_0 : i32, i32
  }
  func.func @transform_8(%arg0: i32, %arg1: i32) -> (i32, i32) {
    %c0_i32 = arith.constant 0 : i32
    %c0_i32_0 = arith.constant 0 : i32
    %c0_i32_1 = arith.constant 0 : i32
    return %c0_i32, %c0_i32_0 : i32, i32
  }
  func.func @transform_9(%arg0: i32, %arg1: i32) -> (i32, i32, i32) {
    %c0_i32 = arith.constant 0 : i32
    %c0_i32_0 = arith.constant 0 : i32
    %c0_i32_1 = arith.constant 0 : i32
    return %arg0, %c0_i32, %c0_i32_0 : i32, i32, i32
  }
  func.func @transform_10(%arg0: i32, %arg1: i32) -> (i32, i32, i32, i32) {
    %c0_i32 = arith.constant 0 : i32
    %c0_i32_0 = arith.constant 0 : i32
    %c0_i32_1 = arith.constant 0 : i32
    return %arg0, %arg1, %c0_i32, %c0_i32_0 : i32, i32, i32, i32
  }
}

</mosaic_0001>

<bundles_post_ra>
// kernel: tpu_custom_call.1
= control target key start
LH: loop header
LB: loop body
LE: loop exit
PB: predicated region body
PF: predicated region fallthrough
CT: control target
= control target key end

     0   :  { %s1805_s0 = inlined_call_operand.vmem [shape: bf16[2,8,32], index: 0, kind: input, shape index: {}]   ;;  %s1806_s1 = inlined_call_operand.vmem [shape: bf16[2,8,32], index: 1, kind: input, shape index: {}]   ;;  %s1807_s2 = inlined_call_operand.vmem [shape: bf16[2,8,32], index: 2, kind: input, shape index: {}]   ;;  %s1808_s3 = inlined_call_operand.vmem [shape: bf16[4,32,8], index: 3, kind: input, shape index: {}]   ;;  %s1809_s4 = inlined_call_operand.vmem [shape: bf16[4,32,8], index: 4, kind: input, shape index: {}]   ;;  %s1810_s5 = inlined_call_operand.vmem [shape: bf16[4,32,8], index: 5, kind: input, shape index: {}]   ;;  %s1811_s6 = inlined_call_operand.vmem [shape: bf16[4,8,32], index: 6, kind: input, shape index: {}]   ;;  %s1812_s7 = inlined_call_operand.vmem [shape: f32[1,32], index: 7, kind: input, shape index: {}]   ;;  %s1813_s8 = inlined_call_operand.vmem [shape: f32[1,32], index: 8, kind: input, shape index: {}]   ;;  %s1814_s9 = inlined_call_operand.hbm [shape: f32[2,8,32], index: 9, kind: output, shape index: {0}]   ;;  %s1815_s10 = inlined_call_operand.hbm [shape: f32[2,4,8,8], index: 10, kind: output, shape index: {1}]  }
   0x1   :  { %1838 = sst [smem:[#allocation25_spill]] %s1805_s0 }
   0x2   :  { %1839 = sst [smem:[#allocation26_spill]] %s1814_s9 }
   0x3   :  { %1840 = sst [smem:[#allocation27_spill]] %s1815_s10 }
   0x4   :  { %16 = vsyncpa [#allocation3], 0 }
   0x5   :  { %18 = vsyncpa [#allocation3 + $0x1], 0 }
   0x6   :  { %19 = vsyncpa [#allocation5], 0 }
   0x7   :  { %21 = vsyncpa [#allocation5 + $0x1], 0  ;;  %s1509_s13 = smov 0   ;;  %s1511_s14 = smov 0  }
   0x8   :  { %s1513_s15 = smov 0   ;;  %s1515_s16 = smov 0  }
   0x9   :  { %s1517_s17 = smov 0   ;;  %s1519_s18 = smov 0  }
   0xa   :  { %s1521_s19 = smov 0   ;;  %s1523_s20 = smov 0  }
   0xb   :  { %s1525_s21 = smov 0   ;;  %s1527_s22 = smov 0  }
   0xc   :  { %s1529_s23 = smov 0  }
   0xd LB: > { %1841 = sst [smem:[#allocation8_spill]] %s1407_s13  ;;  %s1086_s24 = sadd.s32 4294967295, %s1447_s23   ;;  %s1447_s23 = sphi %s1529_s23, %s27_s23   ;;  %s1443_s22 = sphi %s1527_s22, %s1893_s22   ;;  %s1439_s21 = sphi %s1525_s21, %s1892_s21   ;;  %s1435_s20 = sphi %s1523_s20, %s1891_s20   ;;  %s1431_s19 = sphi %s1521_s19, %s1890_s19   ;;  %s1427_s18 = sphi %s1519_s18, %s1889_s18   ;;  %s1423_s17 = sphi %s1517_s17, %s1888_s17   ;;  %s1419_s16 = sphi %s1515_s16, %s1887_s16   ;;  %s1415_s15 = sphi %s1513_s15, %s1886_s15   ;;  %s1411_s14 = sphi %s1511_s14, %s1885_s14   ;;  %s1407_s13 = sphi %s1509_s13, %s1884_s13  }
   0xe   : > { %1842 = sst [smem:[#allocation9_spill]] %s1411_s14  ;;  %s1087_s25 = sadd.s32 4294967294, %s1447_s23  }
   0xf   : > { %1843 = sst [smem:[#allocation10_spill]] %s1415_s15  ;;  %s36_s26 = sadd.s32 1, %s1439_s21 }
  0x10   : > { %1844 = sst [smem:[#allocation11_spill]] %s1419_s16  ;;  %s39_s27 = sadd.s32 1, %s1443_s22 }
  0x11   : > { %1845 = sst [smem:[#allocation12_spill]] %s1423_s17  ;;  %p37_p0 = scmp.ge.s32.totalorder %s36_s26, 4 }
  0x12   : > { %1846 = sst [smem:[#allocation13_spill]] %s1427_s18  ;;  %s270_s28 = sadd.s32 1, %s1427_s18 }
  0x13   : > { %1847 = sst [smem:[#allocation14_spill]] %s1439_s21  ;;  %p280_p1 = scmp.ne.s32.totalorder %s1427_s18, %s1423_s17 }
  0x14   : > { %1848 = sst [smem:[#allocation15_spill]] %s1443_s22  ;;  %p1571_p2 = scmp.eq.s32.totalorder %s1086_s24, 7 }
  0x15   : > { %1849 = sst [smem:[#allocation16_spill]] %s1447_s23  ;;  %s1895_s26 = smov (%p37_p0, %s36_s26), 0 }
  0x16   : > { %1851 = sst [smem:[#allocation17_spill]] %s1895_s26  ;;  %s1897_s27 = smov (!%p37_p0, %s39_s27), %s1443_s22 }
  0x17   : > { %p1580_p3 = por %p1571_p2, %p280_p1  ;;  %p286_p4 = scmp.ne.s32.totalorder %s1423_s17, %s1419_s16 }
  0x18   : > { %p41_p5 = scmp.ge.s32.totalorder %s1897_s27, 2  ;;  %p1586_p6 = scmp.eq.s32.totalorder %s1087_s25, 7 }
  0x19   : > { %s1852_s30 = scalar_select %p1580_p3, 1, 0 }
  0x1a   : > { %s294_s12 = ssub.s32 %s1439_s21, %s1895_s26  ;;  %s298_s24 = sadd.s32 1, %s1415_s15 }
  0x1b   : > { %1853 = sst [smem:[#allocation18_spill]] %s1852_s30  ;;  %s1899_s27 = smov (%p41_p5, %s1897_s27), 0 }
  0x1c   : > { %1855 = sst [smem:[#allocation19_spill]] %s1899_s27  ;;  %p1597_p7 = por %p1586_p6, %p286_p4 }
  0x1d   : > { %p308_p8 = scmp.ne.s32.totalorder %s1415_s15, %s1411_s14  ;;  %s267_s16 = ssub.s32 %s1443_s22, %s1899_s27 }
  0x1e   : > { %s1856_s10 = scalar_select %p1597_p7, 1, 0 }
  0x1f   : > { %p314_p9 = scmp.ne.s32.totalorder %s1411_s14, %s1407_s13  ;;  %p268_p10 = scmp.eq.s32.totalorder %s267_s16, 0 }
  0x20   : > { %1857 = sst [smem:[#allocation20_spill]] %s1856_s10  ;;  %s295_s25 = sor.u32 %s294_s12, %s267_s16 }
  0x21   : > { %p296_p11 = scmp.eq.s32.totalorder %s295_s25, 0  ;;  %p1609_p12 = por %p308_p8, %p1571_p2 }
  0x22   : > { %s1614_s26 = scalar_select %p268_p10, %s1427_s18, %s270_s28  }
  0x23   : > { %s1858_s9 = scalar_select %p1609_p12, 1, 0 }
  0x24   : > { %1860 = sst [smem:[#allocation22_spill]] %s1614_s26  ;;  %p1621_p13 = por %p314_p9, %p1586_p6 }
  0x25   : > { %1859 = sst [smem:[#allocation21_spill]] %s1858_s9  ;;  %p1090_p0 = scmp.ge.s32.totalorder %s1447_s23, 1 }
  0x26   : > { %s1617_s21 = scalar_select %p296_p11, %s1415_s15, %s298_s24  }
  0x27   : > { %s1862_s30 = scalar_select %p1621_p13, 1, 0 }
  0x28   : > { %1861 = sst [smem:[#allocation23_spill]] %s1617_s21  ;;  %p391_p1 = scmp.lt.s32.totalorder %s1447_s23, 9 }
  0x29   : > { %1863 = sst [smem:[#allocation24_spill]] %s1862_s30 }
  0x2a   : > { %p392_p4 = pnand %p1090_p0, %p391_p1 }
  0x2b   : > { %s1826_s16 = sand.u32 (!%p392_p4), 1, %s1423_s17   ;;  %s1827_s28 = sand.u32 (!%p392_p4), 1, %s1411_s14  }
  0x2c   : > { %395 = sbr.rel (%p392_p4) target bundleno = 1533 (0x5fd), region = 56  ;;  %s1091_s29 = sshll.u32 (!%p392_p4), %s1826_s16, 3 }
  0x2d   : > { %s1633_s11 = sshll.u32 (!%p392_p4), %s1827_s28, 3  ;;  %p460_p2 = scmp.lt.s32.totalorder (!%p392_p4), %s1435_s20, 1 }
  0x2e   : > { %p472_p5 = scmp.lt.s32.totalorder (!%p392_p4), %s1431_s19, 3  ;;  %s1669_s28 = scalar_lea.vmem (!%p392_p4), [#allocation2], %s1091_s29 }
  0x2f   : > { %s459_s30 = scalar_lea.vmem (!%p392_p4), [#allocation4], %s1633_s11  ;;  %p1103_p6 = scmp.ne.s32.totalorder (!%p392_p4), %s1431_s19, 0 }
  0x31   : > { %s461_s12 = scalar_select %p460_p2, %s1435_s20, 1 }
  0x32   : > { %s473_s24 = scalar_select %p472_p5, %s1431_s19, 3 }
  0x33   : > { %s1639_s25 = sshll.u32 %s461_s12, 2  ;;  %495 = sbr.rel (%p1103_p6) target bundleno = 58 (0x3a), region = 60 }
  0x34   : > { %s1126_s13 = sshll.u32 %s473_s24, 4  ;;  %s1102_s18 = sshll.u32 %s473_s24, 2 }
  0x35   : > { %s476_s12 = scalar_lea.vmem %s1808_s3, %s1126_s13  ;;  %s481_s22 = scalar_lea.vmem %s1809_s4, %s1126_s13 }
  0x36   : > { %s1662_s26 = scalar_lea.vmem %s1810_s5, %s1126_s13  ;;  %s1667_s15 = scalar_lea.vmem %s1811_s6, %s1102_s18 }
  0x38   : > { %vm496_vm0 = vcmask 261120   ;;  %v1449_v0 = vmov 0.0  }
  0x39   : > { %497 = vst.msk [vmem:[%s1669_s28] sm:$0xff] %vm496_vm0, %v1449_v0 }
  0x3a PF: > { %v1289_v1 = vld [vmem:[%s481_s22 + $0x8] sm:$0xff]   ;;  %v1450_v2 = vmov 0.0   ;;  %v1291_v4 = vld [vmem:[%s481_s22] sm:$0xff]   ;;  %vm1451_vm1 = vmmov 0   ;;  %vm515_vm2 = vcmask 261120   ;;  %s1865_s13 = scalar_lea.vmem %s1806_s1, %s1639_s25  ;;  %s1866_s0 = sld [smem:[#allocation25_spill]] }
  0x3b   : > { %1152 = vmatprep.subr.bf16.mxu1 %v1450_v2  ;;  %1144 = vmatprep.subr.bf16.mxu0 %v1450_v2  ;;  %v1290_v3 = vld [vmem:[%s476_s12 + $0x8] sm:$0xff]   ;;  %v1292_v5 = vld [vmem:[%s476_s12] sm:$0xff]   ;;  %vm681_vm3 = vcmask 64512   ;;  %s1868_s24 = scalar_lea.vmem %s1807_s2, %s1639_s25  ;;  %vm745_vm4 = vcmask 1043456   ;;  %p1116_p8 = scmp.ne.s32.totalorder %s1431_s19, 3 }
  0x3c   : > { %1153 = vmatpush3.bf16.msra.mxu1 %v1289_v1  ;;  %1156 = vmatprep.mubr.msk.bf16.mxu1 %vm1451_vm1, %v1450_v2  ;;  %v559_v6 = vld [vmem:[%s1865_s13] sm:$0xf]  ;;  %v1293_v19 = vld [vmem:[%s1662_s26 + $0x8] sm:$0xff]  }
  0x3d   : > { %1145 = vmatpush3.bf16.msra.mxu0 %v1290_v3  ;;  %1154 = vmatprep.subr.bf16.mxu1 %v1450_v2  ;;  %v1294_v20 = vld [vmem:[%s1662_s26] sm:$0xff]  }
  0x3e   : > { %1146 = vmatprep.subr.bf16.mxu0 %v1450_v2  ;;  %1148 = vmatprep.mubr.msk.bf16.mxu0 %vm1451_vm1, %v1450_v2  ;;  %v619_v21 = vld [vmem:[%s1868_s24] sm:$0xf] }
  0x3f   : > { %v791_v38 = vld [vmem:[%s1667_s15] sm:$0xf] }
  0x40   : > { %1155 = vmatpush3.bf16.msra.mxu1 %v1291_v4  ;;  %s1867_s23 = scalar_lea.vmem %s1866_s0, %s1639_s25  ;;  %v796_v39 = vsel %vm745_vm4, %v791_v38, 0  ;;  %v789_v49 = vld [vmem:[%s1669_s28] sm:$0xff] }
  0x41   : > { %1147 = vmatpush3.bf16.msra.mxu0 %v1292_v5  ;;  %v498_v7 = vld [vmem:[%s1867_s23] sm:$0xf]  ;;  %1168 = vmatprep.subr.bf16.mxu1 %v1450_v2 }
  0x42   : > { %1160 = vmatprep.subr.bf16.mxu0 %v1450_v2 }
  0x43   : > { %1157 = vmatmul.mubr.msk.bf16.vlgmr.msra.gmra.mxu1 %vm515_vm2, %v559_v6 }
  0x44   : > { %1149 = vmatmul.mubr.msk.bf16.vlgmr.msra.gmra.mxu0 %vm515_vm2, %v498_v7  ;;  %1170 = vmatprep.mubr.msk.bf16.mxu1 %vm1451_vm1, %v1450_v2 }
  0x45   : > { %1164 = vmatprep.mubr.msk.bf16.mxu0 %vm1451_vm1, %v1450_v2  ;;  %1161 = vmatpush3.bf16.msra.mxu0 %v1293_v19 }
  0x46   : > { %1162 = vmatprep.subr.bf16.mxu0 %v1450_v2 }
  0x49   : > { %1163 = vmatpush3.bf16.msra.mxu0 %v1294_v20 }
  0x4a   : > { %1174 = vmatprep.subr.bf16.mxu0 %v1450_v2 }
  0x4c   : > { %1165 = vmatmul.mubr.msk.bf16.vlgmr.msra.gmra.mxu0 %vm515_vm2, %v619_v21 }
  0x4d   : > { %1176 = vmatprep.mubr.msk.bf16.mxu0 %vm1451_vm1, %v1450_v2 }
 0x103   : > { %v613_v8 = vpop.f32.mrf.mxu1 }
 0x104   : > { %v680_v9 = vpack.c.bf16 %v613_v8, %v613_v8  ;;  %v553_v10 = vpop.f32.mrf.mxu0 }
 0x105   : > { %v1158_v11 = vpop.f32.mrf.mxu1  ;;  %v679_v17 = vpack.c.bf16 %v553_v10, %v553_v10 }
 0x106   : > { %v686_v12 = vsel %vm681_vm3, %v680_v9, 0  ;;  %v1150_v13 = vpop.f32.mrf.mxu0 }
 0x107   : > { %v616_v14 = vpop.f32.mrf.mxu1  ;;  %1169 = vmatpush3.bf16.xpose.msra.mxu1 %v686_v12 }
 0x108   : > { %v556_v15 = vpop.f32.mrf.mxu0  ;;  %1180 = vmatprep.subr.bf16.mxu1 %v1450_v2 }
 0x109   : > { %v1159_v16 = vpop.f32.mrf.mxu1 }
 0x10a   : > { %v1151_v18 = vpop.f32.mrf.mxu0 }
 0x10c   : > { %v673_v32 = vpop.f32.mrf.mxu0 }
 0x10d   : > { %v741_v36 = vpack.c.bf16 %v673_v32, %v673_v32 }
 0x10e   : > { %1171 = vmatmul.mubr.msk.bf16.vlgmr.msra.gmra.mxu1 %vm681_vm3, %v679_v17  ;;  %v1166_v33 = vpop.f32.mrf.mxu0 }
 0x10f   : > { %1182 = vmatprep.mubr.msk.bf16.mxu1 %vm1451_vm1, %v1450_v2  ;;  %v747_v37 = vsel %vm745_vm4, %v741_v36, 0  ;;  %1181 = vmatpush3.bf16.msra.mxu1 %v796_v39 }
 0x110   : > { %v676_v34 = vpop.f32.mrf.mxu0  ;;  %1175 = vmatpush3.bf16.msra.mxu0 %v747_v37 }
 0x112   : > { %v1167_v35 = vpop.f32.mrf.mxu0 }
 0x1ce   : > { %v722_v22 = vpop.f32.mrf.mxu1 }
 0x1cf   : > { %v728_v23 = vsel %vm681_vm3, %v722_v22, -inf }
 0x1d0   : > { %729 = vmax.xlane.f32.xlu0 %v728_v23  ;;  %v1172_v24 = vpop.f32.mrf.mxu1 }
 0x1d2   : > { %v725_v25 = vpop.f32.mrf.mxu1 }
 0x1d4   : > { %v1173_v26 = vpop.f32.mrf.mxu1 }
 0x259   : > { %v730_v27 = vpop.xlane.xlu0 %729 }
 0x25a   : > { %v731_v28 = vsub.f32 %v722_v22, %v730_v27 }
 0x25c   : > { %v732_v29 = vmul.f32 1.442695, %v731_v28 }
 0x25e   : > { %1295 = vpow2.f32 %v732_v29 }
 0x26b   : > { %v1296_v30 = vpop.eup %1295 }
 0x26c   : > { %v734_v31 = vsel %vm681_vm3, %v1296_v30, 0.0 }
 0x26d   : > { %735 = vadd.xlane.f32.xlu0 %v734_v31 }
 0x2f6   : > { %v736_v40 = vpop.xlane.xlu0 %735 }
 0x2f7   : > { %1297 = vrcp.f32 %v736_v40 }
 0x304   : > { %v1298_v41 = vpop.eup %1297 }
 0x305   : > { %v738_v42 = vmul.f32 %v1298_v41, %v1296_v30 }
 0x307   : > { %739 = vst.msk [vmem:[%s459_s30] sm:$0xff] %vm681_vm3, %v738_v42  ;;  %v740_v43 = vpack.c.bf16 %v738_v42, %v738_v42 }
 0x309   : > { %1177 = vmatmul.mubr.msk.bf16.vlgmr.msra.gmra.mxu0 %vm681_vm3, %v740_v43 }
 0x3c9   : > { %v783_v44 = vpop.f32.mrf.mxu0 }
 0x3ca   : > { %v790_v45 = vpack.c.bf16 %v783_v44, %v783_v44 }
 0x3cb   : > { %v1178_v46 = vpop.f32.mrf.mxu0 }
 0x3cc   : > { %1183 = vmatmul.mubr.msk.bf16.vlgmr.msra.gmra.mxu1 %vm681_vm3, %v790_v45 }
 0x3cd   : > { %v786_v47 = vpop.f32.mrf.mxu0 }
 0x3cf   : > { %v1179_v48 = vpop.f32.mrf.mxu0 }
 0x48c   : > { %v832_v50 = vpop.f32.mrf.mxu1 }
 0x48d   : > { %v838_v51 = vadd.f32 %v832_v50, %v789_v49 }
 0x48e   : > { %v1184_v52 = vpop.f32.mrf.mxu1  ;;  %843 = sbr.rel (%p1116_p8) target bundleno = 1484 (0x5cc), region = 64 }
 0x48f   : > { %839 = vst.msk [vmem:[%s1669_s28] sm:$0xff] %vm515_vm2, %v838_v51 }
 0x490   : > { %v835_v53 = vpop.f32.mrf.mxu1 }
 0x492   : > { %v1185_v54 = vpop.f32.mrf.mxu1 }
 0x493   : > { %v1117_v2 = vld [vmem:[%s1812_s7] ss:$0 sm:$0xff] }
 0x494   : > { %v1118_v4 = vld [vmem:[%s1813_s8] ss:$0 sm:$0xff] }
 0x496   : > { %v844_v55 = vld [vmem:[%s1669_s28] sm:$0xff] }
 0x497   : > { %v845_v56 = vsel %vm515_vm2, %v844_v55, 0.0 }
 0x498   : > { %846 = vadd.xlane.f32.xlu0 %v845_v56 }
 0x521   : > { %v847_v57 = vpop.xlane.xlu0 %846 }
 0x522   : > { %v849_v58 = vmul.f32 0.03125, %v847_v57 }
 0x524   : > { %v850_v59 = vsub.f32 %v844_v55, %v849_v58 }
 0x526   : > { %v851_v60 = vmul.f32 %v850_v59, %v850_v59 }
 0x528   : > { %v852_v61 = vsel %vm515_vm2, %v851_v60, 0.0 }
 0x529   : > { %853 = vadd.xlane.f32.xlu0 %v852_v61 }
 0x5b2   : > { %v854_v62 = vpop.xlane.xlu0 %853 }
 0x5b3   : > { %v855_v63 = vmul.f32 0.03125, %v854_v62 }
 0x5b5   : > { %v856_v0 = vadd.f32 1e-06, %v855_v63 }
 0x5b7   : > { %1299 = vrsqrt.f32 %v856_v0 }
 0x5c4   : > { %v1300_v1 = vpop.eup %1299 }
 0x5c5   : > { %v858_v3 = vmul.f32 %v1300_v1, %v850_v59 }
 0x5c7   : > { %v866_v5 = vmul.f32 %v1117_v2, %v858_v3 }
 0x5c9   : > { %v874_v6 = vadd.f32 %v1118_v4, %v866_v5 }
 0x5cb   : > { %875 = vst.msk [vmem:[%s1669_s28] sm:$0xff] %vm515_vm2, %v874_v6 }
 0x5cc PF: > { %s1869_s27 = sld [smem:[#allocation12_spill]]  ;;  %s1121_s21 = sshll.u32 %s1435_s20, 7 }
 0x5cd   : > { %s1871_s10 = sld [smem:[#allocation26_spill]]  ;;  %s895_s14 = sshll.u32 %s1669_s28, 4  ;;  %s896_s14 = int_to_ptr.vmem [resolvable:$true] %s895_s14 }
 0x5ce   : > { %s1301_s16 = scalar_lea.vmem %s896_s14, 128  ;;  %s1452_s29 = smov [#allocation2]  }
 0x5cf   : > { %p1302_p9 = scmp.ne.s32.totalorder %s896_s14, %s1301_s16  ;;  %s1305_s24 = sshll.u32 %s1452_s29, 4  ;;  %s1306_s24 = int_to_ptr.vmem [resolvable:$false] %s1305_s24 }
 0x5d0   : > { %s1307_s26 = scalar_lea.vmem %s1306_s24, 256  ;;  %p1308_p0 = scmp.lt.s32.totalorder %s896_s14, %s1306_s24 }
 0x5d1   : > { %p1303_p10 = pnand %p1302_p9, %p1580_p3  ;;  %p1309_p1 = scmp.lt.s32.totalorder %s1307_s26, %s1301_s16 }
 0x5d2   : > { %s1872_s17 = sand.u32 1, %s1869_s27  }
 0x5d3   : > { %s893_s13 = scalar_lea.hbm %s1871_s10, %s1121_s21  ;;  %s877_s23 = scalar_lea.sflag [#allocation3], %s1872_s17 }
 0x5d4   : > { %p1304_p11 = pneg %p1303_p10  ;;  %p1310_p4 = por %p1309_p1, %p1308_p0 }
 0x5d6   : > { %p1311_p2 = pnand %p1310_p4, %p1304_p11 }
 0x5d8   : > { %1314 = shalt.err (!%p1311_p2)
}
 0x5d9   : > { %s1315_s25 = scalar_lea.hbm %s893_s13, 128  ;;  %s1319_s22 = scalar_lea.hbm %s1871_s10, 256 }
 0x5da   : > { %p1316_p5 = scmp.ne.s32.totalorder %s893_s13, %s1315_s25  ;;  %p1320_p9 = scmp.lt.s32.totalorder %s893_s13, %s1871_s10 }
 0x5db   : > { %p1321_p10 = scmp.lt.s32.totalorder %s1319_s22, %s1315_s25 }
 0x5dc   : > { %p1317_p6 = pnand %p1316_p5, %p1580_p3 }
 0x5dd   : > { %p1322_p13 = por %p1321_p10, %p1320_p9 }
 0x5de   : > { %p1318_p8 = pneg %p1317_p6 }
 0x5e0   : > { %p1323_p7 = pnand %p1322_p13, %p1318_p8 }
 0x5e2   : > { %1326 = shalt.err (!%p1323_p7)
}
 0x5e3   : > { %s1873_s15 = sld [smem:[#allocation9_spill]]  ;;  %s1122_s17 = sshll.u32 %s1435_s20, 2 }
 0x5e4   : > { %1186 = dma.vmem_to_hbm [thread:$0]  (%p1580_p3), %s896_s14, 128, %s893_s13, %s877_s23  }
 0x5e5   : > { %s910_s16 = sshll.u32 %s459_s30, 4  ;;  %s906_s29 = sadd.s32 %s1431_s19, %s1122_s17  ;;  %s911_s16 = int_to_ptr.vmem [resolvable:$true] %s910_s16 }
 0x5e6   : > { %s1123_s24 = sshll.u32 %s906_s29, 7  ;;  %s1875_s25 = sld [smem:[#allocation27_spill]] }
 0x5e7   : > { %s1327_s21 = scalar_lea.vmem %s911_s16, 128  ;;  %s1453_s18 = smov [#allocation4]  }
 0x5e8   : > { %p1328_p7 = scmp.ne.s32.totalorder %s911_s16, %s1327_s21  ;;  %s1331_s0 = sshll.u32 %s1453_s18, 4  ;;  %s1332_s0 = int_to_ptr.vmem [resolvable:$false] %s1331_s0 }
 0x5e9   : > { %s1876_s22 = sand.u32 1, %s1873_s15   ;;  %s1333_s20 = scalar_lea.vmem %s1332_s0, 256 }
 0x5ea   : > { %s882_s27 = scalar_lea.sflag [#allocation5], %s1876_s22  ;;  %p1329_p13 = pnand %p1328_p7, %p1609_p12 }
 0x5eb   : > { %p1334_p3 = scmp.lt.s32.totalorder %s911_s16, %s1332_s0  ;;  %p1335_p0 = scmp.lt.s32.totalorder %s1333_s20, %s1327_s21 }
 0x5ec   : > { %s908_s12 = scalar_lea.hbm %s1875_s25, %s1123_s24  ;;  %p1330_p11 = pneg %p1329_p13 }
 0x5ed   : > { %p1336_p1 = por %p1335_p0, %p1334_p3 }
 0x5ef   : > { %p1337_p4 = pnand %p1336_p1, %p1330_p11 }
 0x5f1   : > { %1340 = shalt.err (!%p1337_p4)
}
 0x5f2   : > { %s1341_s19 = scalar_lea.hbm %s908_s12, 128  ;;  %s1345_s13 = scalar_lea.hbm %s1875_s25, 1024 }
 0x5f3   : > { %p1342_p2 = scmp.ne.s32.totalorder %s908_s12, %s1341_s19  ;;  %p1346_p8 = scmp.lt.s32.totalorder %s908_s12, %s1875_s25 }
 0x5f4   : > { %p1347_p9 = scmp.lt.s32.totalorder %s1345_s13, %s1341_s19 }
 0x5f5   : > { %p1343_p5 = pnand %p1342_p2, %p1609_p12 }
 0x5f6   : > { %p1348_p10 = por %p1347_p9, %p1346_p8 }
 0x5f7   : > { %p1344_p6 = pneg %p1343_p5 }
 0x5f9   : > { %p1349_p7 = pnand %p1348_p10, %p1344_p6 }
 0x5fb   : > { %1352 = shalt.err (!%p1349_p7)
}
 0x5fc   : > { %1187 = dma.vmem_to_hbm [thread:$0]  (%p1609_p12), %s911_s16, 128, %s908_s12, %s882_s27  }
 0x5fd PF: > { %s1877_s0 = sld [smem:[#allocation16_spill]] }
 0x5fe   : > { %s1878_s15 = sld [smem:[#allocation11_spill]] }
 0x5ff   : > { %s1879_s17 = sld [smem:[#allocation20_spill]] }
 0x603   : > { %p1197_p13 = scmp.ge.s32.totalorder %s1877_s0, 2 }
 0x604   : > { %s922_s29 = sand.u32 1, %s1878_s15  }
 0x605   : > { %p1880_p11 = scmp.ne.s32.totalorder %s1879_s17, 0  ;;  %s923_s24 = scalar_lea.sflag [#allocation3], %s922_s29 }
 0x607   : > { %p1191_p3 = pnand %p1197_p13, %p1880_p11 }
 0x609   : > { %p1192_p0 = pneg %p1191_p3 }
 0x60b   : > { %1398 = dma.done.wait (%p1192_p0), %s923_s24, 128  }
 0x60c   : > { %1400 = vsyncadd (%p1192_p0), %s923_s24, 4294967168  ;;  %s1881_s26 = sld [smem:[#allocation8_spill]] }
 0x60d   : > { %s1882_s28 = sld [smem:[#allocation24_spill]] }
 0x612   : > { %s931_s22 = sand.u32 1, %s1881_s26  }
 0x613   : > { %p1883_p1 = scmp.ne.s32.totalorder %s1882_s28, 0  ;;  %s932_s9 = scalar_lea.sflag [#allocation5], %s931_s22 }
 0x615   : > { %p1194_p4 = pnand %p1197_p13, %p1883_p1 }
 0x617   : > { %p1195_p2 = pneg %p1194_p4 }
 0x619   : > { %1402 = dma.done.wait (%p1195_p2), %s932_s9, 128  }
 0x61a   : > { %1404 = vsyncadd (%p1195_p2), %s932_s9, 4294967168  ;;  %s27_s23 = sadd.s32 1, %s1877_s0   ;;  %s1884_s13 = sld [smem:[#allocation9_spill]] }
 0x61b   : > { %p24_p12 = scmp.ge.s32.totalorder %s27_s23, 10   ;;  %s1885_s14 = sld [smem:[#allocation10_spill]] }
 0x61c   : > { %s1886_s15 = sld [smem:[#allocation23_spill]] }
 0x61d   : > { %s1887_s16 = sld [smem:[#allocation12_spill]] }
 0x61e   : > { %s1888_s17 = sld [smem:[#allocation13_spill]] }
 0x61f   : > { %s1889_s18 = sld [smem:[#allocation22_spill]]  ;;  %26 = sbr.rel (!%p24_p12) target bundleno = 13 (0xd), region = 134 }
 0x620   : > { %s1890_s19 = sld [smem:[#allocation14_spill]] }
 0x621   : > { %s1891_s20 = sld [smem:[#allocation15_spill]] }
 0x622   : > { %s1892_s21 = sld [smem:[#allocation17_spill]] }
 0x623   : > { %s1893_s22 = sld [smem:[#allocation19_spill]] }
 0x624   :  { %937 = vsyncpa [#allocation3], 1 }
 0x625   :  { %939 = vsyncpa [#allocation3 + $0x1], 1 }
 0x626   :  { %940 = vsyncpa [#allocation5], 1 }
 0x627   :  { %942 = vsyncpa [#allocation5 + $0x1], 1 }

</bundles_post_ra>
